<compile_context>
chip_gen: v7x
topology: tpu7x:2x2x1
jax: 0.10.0
libtpu: 0.0.40
codegen_flags: <defaults>
</compile_context>

<pallas_src>
import jax
import jax.numpy as jnp
from jax.experimental import pallas as pl
from jax.experimental.pallas import tpu as pltpu


PATCH = 4
HIDDEN = 128          # lane-dense (multiple of 128)
MLP_HIDDEN = 256
VOCAB = 128           # lane-dense (multiple of 128)
TEXT_LEN = 8


# ----------------------------- fused Pallas kernel ---------------------------

def _siglip_fused_kernel(patches_ref, pw_ref, pb_ref, lng_ref, lnb_ref,
                         text_ref, w1_ref, b1_ref, w2_ref, b2_ref, o_ref):
    """vision_encoder -> token_merging -> phi2_llm for a TB-sized batch tile.

    patches_ref holds the patch tokens pre-grouped as [even ; odd] along the
    token axis, so the merge below is a static aligned slice + VPU average
    (no strided / masked loads, no VMEM round-trip).
    """
    TB, Np, PDp = patches_ref.shape
    T, D = text_ref.shape
    Nm = Np // 2
    V = o_ref.shape[-1]

    # --- vision_encoder: patch embedding (bf16 MXU, f32 accum) + affine LayerNorm
    x = patches_ref[...].reshape(TB * Np, PDp)                            # bf16
    h = jnp.dot(x, pw_ref[...], preferred_element_type=jnp.float32) + pb_ref[...]
    mu = jnp.mean(h, axis=-1, keepdims=True)
    c = h - mu                                                            # centered variance (no E[x^2]-mu^2 cancellation)
    var = jnp.mean(c * c, axis=-1, keepdims=True)
    vis = (c * jax.lax.rsqrt(var + 1e-6)) * lng_ref[...] + lnb_ref[...]   # (TB*Np, D) f32

    # --- token_merging: average adjacent token pairs, entirely in registers.
    # Tokens are pre-grouped [even ; odd], so original pair (2m, 2m+1) sits at
    # rows (m, Nm+m): a static 8-aligned slice and a VPU add.
    vis3 = vis.reshape(TB, Np, D)
    merged = 0.5 * (vis3[:, :Nm, :] + vis3[:, Nm:, :])                    # (TB, Nm, D)

    # --- phi2_llm stand-in: GELU MLP + LM head, applied row-wise.
    def mlp(rows_bf16):
        hh = jnp.dot(rows_bf16, w1_ref[...],
                     preferred_element_type=jnp.float32) + b1_ref[...]
        # TODO(synk): torch nn.GELU defaults to exact erf; tanh approximation used here.
        hh = jax.nn.gelu(hh)
        return jnp.dot(hh.astype(jnp.bfloat16), w2_ref[...],
                       preferred_element_type=jnp.float32) + b2_ref[...]

    # vision rows: all TB batch elements in one matmul (M = TB*Nm)
    vis_logits = mlp(merged.reshape(TB * Nm, D).astype(jnp.bfloat16))     # (TB*Nm, V)
    o_ref[:, :Nm, :] = vis_logits.reshape(TB, Nm, V)

    # text rows are identical across the batch: compute once, broadcast.
    txt_logits = mlp(text_ref[...])                                       # (T, V)
    o_ref[:, Nm:, :] = jnp.broadcast_to(txt_logits[None], (TB, T, V))


# ------------------------------ pallas_call wrapper --------------------------

def _nbytes(x):
    return int(x.size) * x.dtype.itemsize


def _choose_batch_tile(B, target=8):
    """Largest divisor of B <= target, preferring to leave >= 2 grid steps so
    the 'parallel' batch axis can split across v7x's two TensorCores."""
    divs = [d for d in range(1, B + 1) if B % d == 0 and d <= target]
    tb = max(divs)
    two_step = [d for d in divs if B // d >= 2]
    if B >= 2 and two_step:
        tb = max(two_step)
    return tb


def siglip_fused(patches, text_emb, params):
    """patches: (B, Np, PD) f32 patch tokens; text_emb: (T, D) bf16 (shared)."""
    B, Np, PD = patches.shape
    T, D = text_emb.shape
    Hm = params["w1"].shape[1]
    V = params["w2"].shape[1]
    Nm = Np // 2
    S = Nm + T

    # Lane-dense K: zero-pad the patch feature dim to a multiple of 128.
    PDp = max(128, ((PD + 127) // 128) * 128)
    patch_w = params["patch_w"]
    if PDp != PD:
        patches = jnp.pad(patches, ((0, 0), (0, 0), (0, PDp - PD)))
        patch_w = jnp.pad(patch_w, ((0, PDp - PD), (0, 0)))

    # Pre-group tokens as [even ; odd] (free layout plumbing in XLA) so the
    # in-kernel merge is a static aligned slice; feed the MXU bf16 operands.
    patches = jnp.concatenate([patches[:, 0::2, :], patches[:, 1::2, :]], axis=1)
    patches = patches.astype(jnp.bfloat16)

    TB = _choose_batch_tile(B)
    grid = (B // TB,)

    flops = (B * (2 * Np * PDp * D + 2 * Nm * D * Hm + 2 * Nm * Hm * V)
             + (B // TB) * (2 * T * D * Hm + 2 * T * Hm * V))
    transcendentals = B * Nm * Hm + (B // TB) * T * Hm
    bytes_accessed = (_nbytes(patches) + _nbytes(text_emb) + _nbytes(patch_w)
                      + _nbytes(params["patch_b"]) + _nbytes(params["ln_g"])
                      + _nbytes(params["ln_b"]) + _nbytes(params["w1"])
                      + _nbytes(params["b1"]) + _nbytes(params["w2"])
                      + _nbytes(params["b2"]) + B * S * V * 4)
    cost = pl.CostEstimate(flops=flops, transcendentals=transcendentals,
                           bytes_accessed=bytes_accessed)

    # NOTE: weights total well under 1 MB here, so double-buffering their
    # constant-index blocks is harmless.  With a real Phi-2 vocab the (S, V)
    # logits block must be tiled over a vocab grid axis (and weight specs
    # marked pl.Buffered(1)) to stay inside v7x's 64 MiB VMEM.
    return pl.pallas_call(
        _siglip_fused_kernel,
        out_shape=jax.ShapeDtypeStruct((B, S, V), jnp.float32),
        grid=grid,
        in_specs=[
            pl.BlockSpec((TB, Np, PDp), lambda i: (i, 0, 0)),   # patches (batch tile)
            pl.BlockSpec((PDp, D), lambda i: (0, 0)),           # patch_w  (VMEM resident)
            pl.BlockSpec((1, D), lambda i: (0, 0)),             # patch_b
            pl.BlockSpec((1, D), lambda i: (0, 0)),             # LayerNorm gamma
            pl.BlockSpec((1, D), lambda i: (0, 0)),             # LayerNorm beta
            pl.BlockSpec((T, D), lambda i: (0, 0)),             # text embeddings (shared)
            pl.BlockSpec((D, Hm), lambda i: (0, 0)),            # w1
            pl.BlockSpec((1, Hm), lambda i: (0, 0)),            # b1
            pl.BlockSpec((Hm, V), lambda i: (0, 0)),            # w2
            pl.BlockSpec((1, V), lambda i: (0, 0)),             # b2
        ],
        out_specs=pl.BlockSpec((TB, S, V), lambda i: (i, 0, 0)),
        compiler_params=pltpu.CompilerParams(
            dimension_semantics=("parallel",),
        ),
        cost_estimate=cost,
    )(patches, patch_w, params["patch_b"], params["ln_g"], params["ln_b"],
      text_emb, params["w1"], params["b1"], params["w2"], params["b2"])


# ------------------------------ JAX glue -------------------------------------

def extract_patches(image_nchw, P):
    """NCHW -> (B, Np, P*P*C) non-overlapping patches (= Conv2d kernel=stride=P)."""
    B, C, H, W = image_nchw.shape
    x = jnp.transpose(image_nchw, (0, 2, 3, 1))               # NHWC
    x = x.reshape(B, H // P, P, W // P, P, C)
    x = jnp.transpose(x, (0, 1, 3, 2, 4, 5))                   # (B, Hp, Wp, P, P, C)
    return x.reshape(B, (H // P) * (W // P), P * P * C)


def make_params(key, C):
    PD = PATCH * PATCH * C
    ks = jax.random.split(key, 4)
    scale = 0.02
    return {
        # MXU operands stored in bf16 (halves weight DMA bytes; f32 accumulation in-kernel)
        "patch_w": (scale * jax.random.normal(ks[0], (PD, HIDDEN), jnp.float32)
                    ).astype(jnp.bfloat16),
        "patch_b": jnp.zeros((1, HIDDEN), jnp.float32),
        "ln_g": jnp.ones((1, HIDDEN), jnp.float32),
        "ln_b": jnp.zeros((1, HIDDEN), jnp.float32),
        "tok_emb": (scale * jax.random.normal(ks[1], (VOCAB, HIDDEN), jnp.float32)
                    ).astype(jnp.bfloat16),
        "w1": (scale * jax.random.normal(ks[2], (HIDDEN, MLP_HIDDEN), jnp.float32)
               ).astype(jnp.bfloat16),
        "b1": jnp.zeros((1, MLP_HIDDEN), jnp.float32),
        "w2": (scale * jax.random.normal(ks[3], (MLP_HIDDEN, VOCAB), jnp.float32)
               ).astype(jnp.bfloat16),
        "b2": jnp.zeros((1, VOCAB), jnp.float32),
    }


def tokenize(text: str):
    # deterministic toy "tokenizer": char codes mod vocab, pad/truncate to TEXT_LEN
    ids = [ord(c) % VOCAB for c in text][:TEXT_LEN]
    ids = ids + [0] * (TEXT_LEN - len(ids))
    return jnp.asarray(ids, jnp.int32)


def siglip_forward(params, image_nchw, text: str):
    patches = extract_patches(image_nchw, PATCH)                  # (B, Np, PD)
    tok_ids = tokenize(text)
    text_emb = jnp.take(params["tok_emb"], tok_ids, axis=0)       # (T, D) bf16, shared across batch

    # fused: vision_encoder -> token_merging -> phi2_llm in one kernel
    logits = siglip_fused(patches, text_emb, params)              # (B, S, V)

    # TODO(synk): the PyTorch module returns a str; real autoregressive decoding
    # has no Pallas equivalent here, so return logits plus a toy argmax "decode".
    pred_ids = jnp.argmax(logits[:, -1, :], axis=-1)
    return logits, pred_ids


if __name__ == "__main__":
    key = jax.random.PRNGKey(0)
    k_img, k_par = jax.random.split(key)

    B, C, H, W = 2, 4, 16, 16                                     # NCHW
    image = jax.random.normal(k_img, (B, C, H, W), jnp.float32)
    text = "a small test caption"

    params = make_params(k_par, C)

    logits, pred_ids = siglip_forward(params, image, text)
    jax.block_until_ready((logits, pred_ids))

    Np = (H // PATCH) * (W // PATCH)
    assert logits.shape == (B, Np // 2 + TEXT_LEN, VOCAB)
    print("KERNEL_OK")
</pallas_src>

<mosaic_0001>
module attributes {stable_mosaic.version = 11 : i64} {
  func.func @_siglip_fused_kernel(%arg0: i32, %arg1: memref<1x16x128xbf16, #tpu.memory_space<vmem>>, %arg2: memref<128x128xbf16, #tpu.memory_space<vmem>>, %arg3: memref<1x128xf32, #tpu.memory_space<vmem>>, %arg4: memref<1x128xf32, #tpu.memory_space<vmem>>, %arg5: memref<1x128xf32, #tpu.memory_space<vmem>>, %arg6: memref<8x128xbf16, #tpu.memory_space<vmem>>, %arg7: memref<128x256xbf16, #tpu.memory_space<vmem>>, %arg8: memref<1x256xf32, #tpu.memory_space<vmem>>, %arg9: memref<256x128xbf16, #tpu.memory_space<vmem>>, %arg10: memref<1x128xf32, #tpu.memory_space<vmem>>, %arg11: memref<1x16x128xf32, #tpu.memory_space<vmem>>) attributes {dimension_semantics = [#tpu.dimension_semantics<parallel>], iteration_bounds = array<i64: 2>, scalar_prefetch = 0 : i64, scratch_operands = 0 : i64, tpu.core_type = #tpu.core_type<tc>, window_params = [{transform_indices = @transform_0, window_bounds = array<i64: 1, 16, 128>}, {pipeline_mode = #tpu.pipeline_mode<synchronous>, transform_indices = @transform_1, window_bounds = array<i64: 128, 128>}, {pipeline_mode = #tpu.pipeline_mode<synchronous>, transform_indices = @transform_2, window_bounds = array<i64: 1, 128>}, {pipeline_mode = #tpu.pipeline_mode<synchronous>, transform_indices = @transform_3, window_bounds = array<i64: 1, 128>}, {pipeline_mode = #tpu.pipeline_mode<synchronous>, transform_indices = @transform_4, window_bounds = array<i64: 1, 128>}, {pipeline_mode = #tpu.pipeline_mode<synchronous>, transform_indices = @transform_5, window_bounds = array<i64: 8, 128>}, {pipeline_mode = #tpu.pipeline_mode<synchronous>, transform_indices = @transform_6, window_bounds = array<i64: 128, 256>}, {pipeline_mode = #tpu.pipeline_mode<synchronous>, transform_indices = @transform_7, window_bounds = array<i64: 1, 256>}, {pipeline_mode = #tpu.pipeline_mode<synchronous>, transform_indices = @transform_8, window_bounds = array<i64: 256, 128>}, {pipeline_mode = #tpu.pipeline_mode<synchronous>, transform_indices = @transform_9, window_bounds = array<i64: 1, 128>}, {transform_indices = @transform_10, window_bounds = array<i64: 1, 16, 128>}]} {
    %c0 = arith.constant 0 : index
    %c0_0 = arith.constant 0 : index
    %c0_1 = arith.constant 0 : index
    %0 = vector.load %arg1[%c0, %c0_0, %c0_1] : memref<1x16x128xbf16, #tpu.memory_space<vmem>>, vector<1x16x128xbf16>
    %1 = vector.shape_cast %0 : vector<1x16x128xbf16> to vector<16x128xbf16>
    %c0_2 = arith.constant 0 : index
    %c0_3 = arith.constant 0 : index
    %2 = vector.load %arg2[%c0_2, %c0_3] : memref<128x128xbf16, #tpu.memory_space<vmem>>, vector<128x128xbf16>
    %cst = arith.constant dense<0.000000e+00> : vector<16x128xf32>
    %3 = tpu.matmul %1, %2, %cst {dimension_numbers = #tpu.dot_dimension_numbers<[1], [0], [0], [1], [0, 0, 1, 1], [], []>} : vector<16x128xbf16>, vector<128x128xbf16>, vector<16x128xf32> -> vector<16x128xf32>
    %c0_4 = arith.constant 0 : index
    %c0_5 = arith.constant 0 : index
    %4 = vector.load %arg3[%c0_4, %c0_5] : memref<1x128xf32, #tpu.memory_space<vmem>>, vector<1x128xf32>
    %5 = vector.broadcast %4 : vector<1x128xf32> to vector<16x128xf32>
    %6 = arith.addf %3, %5 : vector<16x128xf32>
    %cst_6 = arith.constant dense<0.000000e+00> : vector<16xf32>
    %7 = vector.multi_reduction <add>, %6, %cst_6 [1] : vector<16x128xf32> to vector<16xf32>
    %8 = vector.shape_cast %7 : vector<16xf32> to vector<16x1xf32>
    %cst_7 = arith.constant 1.280000e+02 : f32
    %9 = vector.broadcast %cst_7 : f32 to vector<16x1xf32>
    %10 = arith.divf %8, %9 : vector<16x1xf32>
    %11 = vector.broadcast %10 : vector<16x1xf32> to vector<16x128xf32>
    %12 = arith.subf %6, %11 : vector<16x128xf32>
    %13 = arith.mulf %12, %12 : vector<16x128xf32>
    %cst_8 = arith.constant dense<0.000000e+00> : vector<16xf32>
    %14 = vector.multi_reduction <add>, %13, %cst_8 [1] : vector<16x128xf32> to vector<16xf32>
    %15 = vector.shape_cast %14 : vector<16xf32> to vector<16x1xf32>
    %cst_9 = arith.constant 1.280000e+02 : f32
    %16 = vector.broadcast %cst_9 : f32 to vector<16x1xf32>
    %17 = arith.divf %15, %16 : vector<16x1xf32>
    %cst_10 = arith.constant 9.99999997E-7 : f32
    %18 = vector.broadcast %cst_10 : f32 to vector<16x1xf32>
    %19 = arith.addf %17, %18 : vector<16x1xf32>
    %20 = math.rsqrt %19 : vector<16x1xf32>
    %21 = vector.broadcast %20 : vector<16x1xf32> to vector<16x128xf32>
    %22 = arith.mulf %12, %21 : vector<16x128xf32>
    %c0_11 = arith.constant 0 : index
    %c0_12 = arith.constant 0 : index
    %23 = vector.load %arg4[%c0_11, %c0_12] : memref<1x128xf32, #tpu.memory_space<vmem>>, vector<1x128xf32>
    %24 = vector.broadcast %23 : vector<1x128xf32> to vector<16x128xf32>
    %25 = arith.mulf %22, %24 : vector<16x128xf32>
    %c0_13 = arith.constant 0 : index
    %c0_14 = arith.constant 0 : index
    %26 = vector.load %arg5[%c0_13, %c0_14] : memref<1x128xf32, #tpu.memory_space<vmem>>, vector<1x128xf32>
    %27 = vector.broadcast %26 : vector<1x128xf32> to vector<16x128xf32>
    %28 = arith.addf %25, %27 : vector<16x128xf32>
    %29 = vector.shape_cast %28 : vector<16x128xf32> to vector<1x16x128xf32>
    %30 = vector.extract_strided_slice %29 {offsets = [0, 0, 0], sizes = [1, 8, 128], strides = [1, 1, 1]} : vector<1x16x128xf32> to vector<1x8x128xf32>
    %31 = vector.extract_strided_slice %29 {offsets = [0, 8, 0], sizes = [1, 8, 128], strides = [1, 1, 1]} : vector<1x16x128xf32> to vector<1x8x128xf32>
    %32 = arith.addf %30, %31 : vector<1x8x128xf32>
    %cst_15 = arith.constant 5.000000e-01 : f32
    %33 = vector.broadcast %cst_15 : f32 to vector<1x8x128xf32>
    %34 = arith.mulf %33, %32 : vector<1x8x128xf32>
    %35 = vector.shape_cast %34 : vector<1x8x128xf32> to vector<8x128xf32>
    %36 = arith.truncf %35 : vector<8x128xf32> to vector<8x128xbf16>
    %c0_16 = arith.constant 0 : index
    %c0_17 = arith.constant 0 : index
    %37 = vector.load %arg7[%c0_16, %c0_17] : memref<128x256xbf16, #tpu.memory_space<vmem>>, vector<128x256xbf16>
    %cst_18 = arith.constant dense<0.000000e+00> : vector<8x256xf32>
    %38 = tpu.matmul %36, %37, %cst_18 {dimension_numbers = #tpu.dot_dimension_numbers<[1], [0], [0], [1], [0, 0, 1, 1], [], []>} : vector<8x128xbf16>, vector<128x256xbf16>, vector<8x256xf32> -> vector<8x256xf32>
    %c0_19 = arith.constant 0 : index
    %c0_20 = arith.constant 0 : index
    %39 = vector.load %arg8[%c0_19, %c0_20] : memref<1x256xf32, #tpu.memory_space<vmem>>, vector<1x256xf32>
    %40 = vector.broadcast %39 : vector<1x256xf32> to vector<8x256xf32>
    %41 = arith.addf %38, %40 : vector<8x256xf32>
    %42 = arith.mulf %41, %41 : vector<8x256xf32>
    %43 = arith.mulf %41, %42 : vector<8x256xf32>
    %cst_21 = arith.constant 4.471500e-02 : f32
    %44 = vector.broadcast %cst_21 : f32 to vector<8x256xf32>
    %45 = arith.mulf %44, %43 : vector<8x256xf32>
    %46 = arith.addf %41, %45 : vector<8x256xf32>
    %cst_22 = arith.constant 0.797884583 : f32
    %47 = vector.broadcast %cst_22 : f32 to vector<8x256xf32>
    %48 = arith.mulf %47, %46 : vector<8x256xf32>
    %49 = math.tanh %48 : vector<8x256xf32>
    %cst_23 = arith.constant 1.000000e+00 : f32
    %50 = vector.broadcast %cst_23 : f32 to vector<8x256xf32>
    %51 = arith.addf %50, %49 : vector<8x256xf32>
    %cst_24 = arith.constant 5.000000e-01 : f32
    %52 = vector.broadcast %cst_24 : f32 to vector<8x256xf32>
    %53 = arith.mulf %52, %51 : vector<8x256xf32>
    %54 = arith.mulf %41, %53 : vector<8x256xf32>
    %55 = arith.truncf %54 : vector<8x256xf32> to vector<8x256xbf16>
    %c0_25 = arith.constant 0 : index
    %c0_26 = arith.constant 0 : index
    %56 = vector.load %arg9[%c0_25, %c0_26] : memref<256x128xbf16, #tpu.memory_space<vmem>>, vector<256x128xbf16>
    %cst_27 = arith.constant dense<0.000000e+00> : vector<8x128xf32>
    %57 = tpu.matmul %55, %56, %cst_27 {dimension_numbers = #tpu.dot_dimension_numbers<[1], [0], [0], [1], [0, 0, 1, 1], [], []>} : vector<8x256xbf16>, vector<256x128xbf16>, vector<8x128xf32> -> vector<8x128xf32>
    %c0_28 = arith.constant 0 : index
    %c0_29 = arith.constant 0 : index
    %58 = vector.load %arg10[%c0_28, %c0_29] : memref<1x128xf32, #tpu.memory_space<vmem>>, vector<1x128xf32>
    %59 = vector.broadcast %58 : vector<1x128xf32> to vector<8x128xf32>
    %60 = arith.addf %57, %59 : vector<8x128xf32>
    %61 = vector.shape_cast %60 : vector<8x128xf32> to vector<1x8x128xf32>
    %c0_30 = arith.constant 0 : index
    %c0_31 = arith.constant 0 : index
    %c0_32 = arith.constant 0 : index
    %62 = vector.load %arg11[%c0_30, %c0_31, %c0_32] : memref<1x16x128xf32, #tpu.memory_space<vmem>>, vector<1x8x128xf32>
    tpu.vector_store %arg11[%c0_30, %c0_31, %c0_32], %61 {strides = array<i32>} : memref<1x16x128xf32, #tpu.memory_space<vmem>>, vector<1x8x128xf32>,
    %c0_33 = arith.constant 0 : index
    %c0_34 = arith.constant 0 : index
    %63 = vector.load %arg6[%c0_33, %c0_34] : memref<8x128xbf16, #tpu.memory_space<vmem>>, vector<8x128xbf16>
    %c0_35 = arith.constant 0 : index
    %c0_36 = arith.constant 0 : index
    %64 = vector.load %arg7[%c0_35, %c0_36] : memref<128x256xbf16, #tpu.memory_space<vmem>>, vector<128x256xbf16>
    %cst_37 = arith.constant dense<0.000000e+00> : vector<8x256xf32>
    %65 = tpu.matmul %63, %64, %cst_37 {dimension_numbers = #tpu.dot_dimension_numbers<[1], [0], [0], [1], [0, 0, 1, 1], [], []>} : vector<8x128xbf16>, vector<128x256xbf16>, vector<8x256xf32> -> vector<8x256xf32>
    %c0_38 = arith.constant 0 : index
    %c0_39 = arith.constant 0 : index
    %66 = vector.load %arg8[%c0_38, %c0_39] : memref<1x256xf32, #tpu.memory_space<vmem>>, vector<1x256xf32>
    %67 = vector.broadcast %66 : vector<1x256xf32> to vector<8x256xf32>
    %68 = arith.addf %65, %67 : vector<8x256xf32>
    %69 = arith.mulf %68, %68 : vector<8x256xf32>
    %70 = arith.mulf %68, %69 : vector<8x256xf32>
    %cst_40 = arith.constant 4.471500e-02 : f32
    %71 = vector.broadcast %cst_40 : f32 to vector<8x256xf32>
    %72 = arith.mulf %71, %70 : vector<8x256xf32>
    %73 = arith.addf %68, %72 : vector<8x256xf32>
    %cst_41 = arith.constant 0.797884583 : f32
    %74 = vector.broadcast %cst_41 : f32 to vector<8x256xf32>
    %75 = arith.mulf %74, %73 : vector<8x256xf32>
    %76 = math.tanh %75 : vector<8x256xf32>
    %cst_42 = arith.constant 1.000000e+00 : f32
    %77 = vector.broadcast %cst_42 : f32 to vector<8x256xf32>
    %78 = arith.addf %77, %76 : vector<8x256xf32>
    %cst_43 = arith.constant 5.000000e-01 : f32
    %79 = vector.broadcast %cst_43 : f32 to vector<8x256xf32>
    %80 = arith.mulf %79, %78 : vector<8x256xf32>
    %81 = arith.mulf %68, %80 : vector<8x256xf32>
    %82 = arith.truncf %81 : vector<8x256xf32> to vector<8x256xbf16>
    %c0_44 = arith.constant 0 : index
    %c0_45 = arith.constant 0 : index
    %83 = vector.load %arg9[%c0_44, %c0_45] : memref<256x128xbf16, #tpu.memory_space<vmem>>, vector<256x128xbf16>
    %cst_46 = arith.constant dense<0.000000e+00> : vector<8x128xf32>
    %84 = tpu.matmul %82, %83, %cst_46 {dimension_numbers = #tpu.dot_dimension_numbers<[1], [0], [0], [1], [0, 0, 1, 1], [], []>} : vector<8x256xbf16>, vector<256x128xbf16>, vector<8x128xf32> -> vector<8x128xf32>
    %c0_47 = arith.constant 0 : index
    %c0_48 = arith.constant 0 : index
    %85 = vector.load %arg10[%c0_47, %c0_48] : memref<1x128xf32, #tpu.memory_space<vmem>>, vector<1x128xf32>
    %86 = vector.broadcast %85 : vector<1x128xf32> to vector<8x128xf32>
    %87 = arith.addf %84, %86 : vector<8x128xf32>
    %88 = vector.shape_cast %87 : vector<8x128xf32> to vector<1x8x128xf32>
    %c0_49 = arith.constant 0 : index
    %c8 = arith.constant 8 : index
    %c0_50 = arith.constant 0 : index
    %89 = vector.load %arg11[%c0_49, %c8, %c0_50] : memref<1x16x128xf32, #tpu.memory_space<vmem>>, vector<1x8x128xf32>
    tpu.vector_store %arg11[%c0_49, %c8, %c0_50], %88 {strides = array<i32>} : memref<1x16x128xf32, #tpu.memory_space<vmem>>, vector<1x8x128xf32>,
    return
  }
  func.func @transform_0(%arg0: i32) -> (i32, i32, i32) {
    %c0_i32 = arith.constant 0 : i32
    %c0_i32_0 = arith.constant 0 : i32
    %c0_i32_1 = arith.constant 0 : i32
    return %arg0, %c0_i32, %c0_i32_0 : i32, i32, i32
  }
  func.func @transform_1(%arg0: i32) -> (i32, i32) {
    %c0_i32 = arith.constant 0 : i32
    %c0_i32_0 = arith.constant 0 : i32
    %c0_i32_1 = arith.constant 0 : i32
    return %c0_i32, %c0_i32_0 : i32, i32
  }
  func.func @transform_2(%arg0: i32) -> (i32, i32) {
    %c0_i32 = arith.constant 0 : i32
    %c0_i32_0 = arith.constant 0 : i32
    %c0_i32_1 = arith.constant 0 : i32
    return %c0_i32, %c0_i32_0 : i32, i32
  }
  func.func @transform_3(%arg0: i32) -> (i32, i32) {
    %c0_i32 = arith.constant 0 : i32
    %c0_i32_0 = arith.constant 0 : i32
    %c0_i32_1 = arith.constant 0 : i32
    return %c0_i32, %c0_i32_0 : i32, i32
  }
  func.func @transform_4(%arg0: i32) -> (i32, i32) {
    %c0_i32 = arith.constant 0 : i32
    %c0_i32_0 = arith.constant 0 : i32
    %c0_i32_1 = arith.constant 0 : i32
    return %c0_i32, %c0_i32_0 : i32, i32
  }
  func.func @transform_5(%arg0: i32) -> (i32, i32) {
    %c0_i32 = arith.constant 0 : i32
    %c0_i32_0 = arith.constant 0 : i32
    %c0_i32_1 = arith.constant 0 : i32
    return %c0_i32, %c0_i32_0 : i32, i32
  }
  func.func @transform_6(%arg0: i32) -> (i32, i32) {
    %c0_i32 = arith.constant 0 : i32
    %c0_i32_0 = arith.constant 0 : i32
    %c0_i32_1 = arith.constant 0 : i32
    return %c0_i32, %c0_i32_0 : i32, i32
  }
  func.func @transform_7(%arg0: i32) -> (i32, i32) {
    %c0_i32 = arith.constant 0 : i32
    %c0_i32_0 = arith.constant 0 : i32
    %c0_i32_1 = arith.constant 0 : i32
    return %c0_i32, %c0_i32_0 : i32, i32
  }
  func.func @transform_8(%arg0: i32) -> (i32, i32) {
    %c0_i32 = arith.constant 0 : i32
    %c0_i32_0 = arith.constant 0 : i32
    %c0_i32_1 = arith.constant 0 : i32
    return %c0_i32, %c0_i32_0 : i32, i32
  }
  func.func @transform_9(%arg0: i32) -> (i32, i32) {
    %c0_i32 = arith.constant 0 : i32
    %c0_i32_0 = arith.constant 0 : i32
    %c0_i32_1 = arith.constant 0 : i32
    return %c0_i32, %c0_i32_0 : i32, i32
  }
  func.func @transform_10(%arg0: i32) -> (i32, i32, i32) {
    %c0_i32 = arith.constant 0 : i32
    %c0_i32_0 = arith.constant 0 : i32
    %c0_i32_1 = arith.constant 0 : i32
    return %arg0, %c0_i32, %c0_i32_0 : i32, i32, i32
  }
}

</mosaic_0001>

<bundles_post_ra>
// kernel: tpu_custom_call.1
= control target key start
LH: loop header
LB: loop body
LE: loop exit
PB: predicated region body
PF: predicated region fallthrough
CT: control target
= control target key end

     0   :  { %s2283_s0 = inlined_call_operand.hbm [shape: bf16[2,16,128], index: 0, kind: input, shape index: {}]   ;;  %s2284_s1 = inlined_call_operand.hbm [shape: bf16[128,128], index: 1, kind: input, shape index: {}]   ;;  %s2285_s2 = inlined_call_operand.vmem [shape: f32[1,128], index: 2, kind: input, shape index: {}]   ;;  %s2286_s3 = inlined_call_operand.vmem [shape: f32[1,128], index: 3, kind: input, shape index: {}]   ;;  %s2287_s4 = inlined_call_operand.vmem [shape: f32[1,128], index: 4, kind: input, shape index: {}]   ;;  %s2288_s5 = inlined_call_operand.vmem [shape: bf16[8,128], index: 5, kind: input, shape index: {}]   ;;  %s2289_s6 = inlined_call_operand.hbm [shape: bf16[128,256], index: 6, kind: input, shape index: {}]   ;;  %s2290_s7 = inlined_call_operand.vmem [shape: f32[1,256], index: 7, kind: input, shape index: {}]   ;;  %s2291_s8 = inlined_call_operand.hbm [shape: bf16[256,128], index: 8, kind: input, shape index: {}]   ;;  %s2292_s9 = inlined_call_operand.vmem [shape: f32[1,128], index: 9, kind: input, shape index: {}]   ;;  %s2293_s10 = inlined_call_operand.hbm [shape: f32[2,16,128], index: 10, kind: output, shape index: {}]  }
   0x1   :  { %2304 = sst [smem:[#allocation17_spill]] %s2284_s1 }
   0x2   :  { %2305 = sst [smem:[#allocation18_spill]] %s2292_s9 }
   0x3   :  { %2306 = sst [smem:[#allocation19_spill]] %s2293_s10 }
   0x4   :  { %15 = vsyncpa [#allocation3], 0 }
   0x5   :  { %17 = vsyncpa [#allocation3 + $0x1], 0 }
   0x6   :  { %18 = vsyncpa [#allocation6], 0 }
   0x7   :  { %19 = vsyncpa [#allocation9], 0 }
   0x8   :  { %20 = vsyncpa [#allocation4], 0 }
   0x9   :  { %22 = vsyncpa [#allocation4 + $0x1], 0  ;;  %s1989_s13 = smov 0   ;;  %s1991_s14 = smov 0  }
   0xa   :  { %s1993_s15 = smov 0   ;;  %s1995_s16 = smov 0  }
   0xb LB: > { %2307 = sst [smem:[#allocation15_spill]] %s1906_s13  ;;  %s2010_s17 = sadd.s32 4294967295, %s1918_s16   ;;  %s1918_s16 = sphi %s1995_s16, %s2335_s16   ;;  %s1914_s15 = sphi %s1993_s15, %s2334_s15   ;;  %s1910_s14 = sphi %s1991_s14, %s2333_s14   ;;  %s1906_s13 = sphi %s1989_s13, %s2332_s13  }
   0xc   : > { %s1394_s18 = sadd.s32 4294967294, %s1918_s16   ;;  %p48_p0 = scmp.ne.s32.totalorder %s1910_s14, %s1906_s13 }
   0xd   : > { %p2294_p1 = scmp.eq.s32.totalorder %s2010_s17, 0  ;;  %p267_p3 = scmp.eq.s32.totalorder %s1394_s18, 1 }
   0xe   : > { %p1395_p5 = scmp.ge.s32.totalorder %s1918_s16, 1  ;;  %p274_p7 = scmp.lt.s32.totalorder %s1918_s16, 3 }
   0xf   : > { %p2019_p4 = por %p2294_p1, %p48_p0  ;;  %p2024_p6 = por %p267_p3, %p48_p0 }
  0x10   : > { %p2029_p8 = pnand %p1395_p5, %p274_p7  ;;  %s1920_s22 = smov [#allocation5]  }
  0x11   : > { %s2308_s19 = scalar_select %p2019_p4, 1, 0 }
  0x12   : > { %s2309_s20 = scalar_select %p2024_p6, 1, 0 }
  0x13   : > { %s2311_s21 = scalar_select %p2029_p8, 1, 0 }
  0x14   : > { %2310 = sst [smem:[#allocation16_spill]] %s2309_s20  ;;  %s286_s23 = sshll.u32 %s1920_s22, 4  ;;  %s2033_s23 = int_to_ptr.vmem [resolvable:$true] %s286_s23 }
  0x15   : > { %p1583_p9 = pneg %p2029_p8  ;;  %s1921_s25 = smov [#allocation7]  }
  0x16   : > { %s311_s26 = sshll.u32 %s1921_s25, 4  ;;  %s2313_s1 = sld [smem:[#allocation17_spill]]  ;;  %s2044_s26 = int_to_ptr.vmem [resolvable:$true] %s311_s26 }
  0x17   : > { %p2040_p11 = pnand %p1583_p9, %p2294_p1 }
  0x19   : > { %p2054_p13 = pneg %p2040_p11 }
  0x1c   : > { %s1730_s29 = scalar_lea.hbm %s2313_s1, 1024 }
  0x1d   : > { %p1731_p12 = scmp.ne.s32.totalorder %s2313_s1, %s1730_s29  ;;  %p1737_p5 = scmp.lt.u32.totalorder %s1730_s29, %s2313_s1 }
  0x1f   : > { %p1733_p0 = pnand %p2054_p13, %p1731_p12 }
  0x21   : > { %p1734_p3 = pneg %p1733_p0 }
  0x23   : > { %p1739_p7 = pnand %p1737_p5, %p1734_p3 }
  0x25   : > { %1742 = shalt.err (!%p1739_p7)
}
  0x26   : > { %s1743_s25 = scalar_lea.vmem %s2033_s23, 1024  ;;  %p1751_p2 = scmp.lt.s32.totalorder %s2033_s23, %s2033_s23 }
  0x27   : > { %p1744_p9 = scmp.ne.s32.totalorder %s2033_s23, %s1743_s25  ;;  %p1752_p6 = scmp.lt.s32.totalorder %s1743_s25, %s1743_s25 }
  0x29   : > { %p1746_p10 = pnand %p1744_p9, %p2054_p13  ;;  %p1753_p12 = por %p1752_p6, %p1751_p2 }
  0x2b   : > { %p1747_p1 = pneg %p1746_p10 }
  0x2d   : > { %p1754_p0 = pnand %p1753_p12, %p1747_p1 }
  0x2f   : > { %1757 = shalt.err (!%p1754_p0)
}
  0x30   : > { %s2298_s27 = smov 64   ;;  %s2300_s28 = smov 4  }
  0x31   : > { %1586 = dma.hbm_to_vmem [thread:$0]  (!%p2040_p11), %s2313_s1, 1024, %s2033_s23, [#allocation6], %s2298_s27, %s2298_s27, %s2300_s28  }
  0x32   : > { %s1758_s22 = scalar_lea.hbm %s2289_s6, 2048 }
  0x33   : > { %p1759_p1 = scmp.ne.s32.totalorder %s2289_s6, %s1758_s22  ;;  %p1765_p10 = scmp.lt.u32.totalorder %s1758_s22, %s2289_s6 }
  0x35   : > { %p1761_p2 = pnand %p1759_p1, %p2054_p13 }
  0x37   : > { %p1762_p6 = pneg %p1761_p2 }
  0x39   : > { %p1767_p3 = pnand %p1765_p10, %p1762_p6 }
  0x3b   : > { %1770 = shalt.err (!%p1767_p3)
}
  0x3c   : > { %s1771_s23 = scalar_lea.vmem %s2044_s26, 2048  ;;  %p1779_p12 = scmp.lt.s32.totalorder %s2044_s26, %s2044_s26 }
  0x3d   : > { %p1772_p5 = scmp.ne.s32.totalorder %s2044_s26, %s1771_s23  ;;  %p1780_p0 = scmp.lt.s32.totalorder %s1771_s23, %s1771_s23 }
  0x3f   : > { %p1774_p7 = pnand %p1772_p5, %p2054_p13  ;;  %p1781_p1 = por %p1780_p0, %p1779_p12 }
  0x41   : > { %p1775_p9 = pneg %p1774_p7 }
  0x43   : > { %p1782_p2 = pnand %p1781_p1, %p1775_p9 }
  0x45   : > { %1785 = shalt.err (!%p1782_p2)
}
  0x46   : > { %s1924_s20 = smov 128   ;;  %s1925_s10 = smov 8  }
  0x47   : > { %1589 = dma.hbm_to_vmem [thread:$0]  (!%p2040_p11), %s2289_s6, 2048, %s2044_s26, [#allocation6], %s1924_s20, %s1924_s20, %s1925_s10  }
  0x48   : > { %s1926_s30 = smov [#allocation8]   ;;  %s2102_s18 = sadd.s32 1, %s1918_s16  }
  0x49   : > { %s327_s11 = sshll.u32 %s1926_s30, 4  ;;  %s1786_s23 = scalar_lea.hbm %s2291_s8, 2048  ;;  %s328_s11 = int_to_ptr.vmem [resolvable:$true] %s327_s11 }
  0x4a   : > { %p1787_p6 = scmp.ne.s32.totalorder %s2291_s8, %s1786_s23  ;;  %p1793_p5 = scmp.lt.u32.totalorder %s1786_s23, %s2291_s8 }
  0x4c   : > { %p1789_p10 = pnand %p1787_p6, %p2054_p13 }
  0x4e   : > { %p1790_p3 = pneg %p1789_p10 }
  0x50   : > { %p1795_p7 = pnand %p1793_p5, %p1790_p3 }
  0x52   : > { %1798 = shalt.err (!%p1795_p7)
}
  0x53   : > { %s1799_s26 = scalar_lea.vmem %s328_s11, 2048  ;;  %p1807_p1 = scmp.lt.s32.totalorder %s328_s11, %s328_s11 }
  0x54   : > { %p1800_p9 = scmp.ne.s32.totalorder %s328_s11, %s1799_s26  ;;  %p1808_p2 = scmp.lt.s32.totalorder %s1799_s26, %s1799_s26 }
  0x56   : > { %p1802_p12 = pnand %p1800_p9, %p2054_p13  ;;  %p1809_p4 = por %p1808_p2, %p1807_p1 }
  0x58   : > { %p1803_p0 = pneg %p1802_p12 }
  0x5a   : > { %p1810_p8 = pnand %p1809_p4, %p1803_p0 }
  0x5c   : > { %1813 = shalt.err (!%p1810_p8)
}
  0x5d   : > { %s2315_s27 = smov 4   ;;  %s2316_s28 = smov 64  }
  0x5e   : > { %1592 = dma.hbm_to_vmem [thread:$0]  (!%p2040_p11), %s2291_s8, 2048, %s328_s11, [#allocation9], %s2316_s28, %s2316_s28, %s2315_s27  }
  0x5f   : > { %s32_s12 = ssub.s32 %s1918_s16, %s2102_s18  ;;  %s35_s24 = sadd.s32 1, %s1914_s15 }
  0x60   : > { %p33_p4 = scmp.eq.s32.totalorder %s32_s12, 0  ;;  %p42_p8 = scmp.ne.s32.totalorder %s1914_s15, %s1910_s14 }
  0x61   : > { %p43_p13 = scmp.eq.s32.totalorder %s1918_s16, 0  ;;  %p1604_p6 = scmp.lt.s32.totalorder %s1918_s16, 2 }
  0x62   : > { %s2133_s20 = scalar_select %p33_p4, %s1914_s15, %s35_s24  }
  0x63   : > { %p44_p10 = por %p43_p13, %p42_p8  ;;  %p2317_p3 = scmp.eq.s32.totalorder %s2010_s17, 1 }
  0x64   : > { %s344_s13 = sand.u32 1, %s1914_s15   ;;  %s1492_s29 = sshll.u32 %s1918_s16, 7 }
  0x65   : > { %p2137_p5 = por %p2317_p3, %p42_p8  ;;  %s1400_s30 = sshll.u32 %s344_s13, 3 }
  0x66   : > { %s2146_s11 = scalar_lea.hbm %s2283_s0, %s1492_s29  ;;  %s348_s23 = scalar_lea.vmem [#allocation2], %s1400_s30 }
  0x67   : > { %s355_s26 = sshll.u32 %s348_s23, 4  ;;  %p2148_p11 = pnand %p1604_p6, %p44_p10  ;;  %s2152_s26 = int_to_ptr.vmem [resolvable:$true] %s355_s26 }
  0x68   : > { %s2154_s9 = scalar_lea.sflag [#allocation3], %s344_s13  ;;  %s1814_s12 = scalar_lea.hbm %s2146_s11, 128 }
  0x69   : > { %p1815_p7 = scmp.ne.s32.totalorder %s2146_s11, %s1814_s12  ;;  %p1816_p9 = pneg %p2148_p11 }
  0x6a   : > { %s1819_s30 = scalar_lea.hbm %s2283_s0, 256  ;;  %p1820_p1 = scmp.lt.u32.totalorder %s2146_s11, %s2283_s0 }
  0x6b   : > { %p1817_p12 = pnand %p1816_p9, %p1815_p7  ;;  %p1821_p2 = scmp.lt.u32.totalorder %s1819_s30, %s1814_s12 }
  0x6c   : > { %p1823_p8 = scmp.lt.u32.totalorder %s1814_s12, %s2146_s11 }
  0x6d   : > { %p1818_p0 = pneg %p1817_p12  ;;  %p1822_p4 = por %p1821_p2, %p1820_p1 }
  0x6f   : > { %p1824_p13 = por %p1823_p8, %p1822_p4 }
  0x71   : > { %p1825_p6 = pnand %p1824_p13, %p1818_p0 }
  0x73   : > { %1828 = shalt.err (!%p1825_p6)
}
  0x74   : > { %s1829_s13 = scalar_lea.vmem %s2152_s26, 128  ;;  %s1927_s23 = smov [#allocation2]  }
  0x75   : > { %p1830_p10 = scmp.ne.s32.totalorder %s2152_s26, %s1829_s13  ;;  %s1834_s24 = sshll.u32 %s1927_s23, 4  ;;  %s1835_s24 = int_to_ptr.vmem [resolvable:$false] %s1834_s24 }
  0x76   : > { %s1836_s29 = scalar_lea.vmem %s1835_s24, 256  ;;  %p1837_p12 = scmp.lt.s32.totalorder %s2152_s26, %s1835_s24 }
  0x77   : > { %p1832_p3 = pnand %p1830_p10, %p1816_p9  ;;  %p1838_p1 = scmp.lt.s32.totalorder %s1836_s29, %s1829_s13 }
  0x79   : > { %p1833_p7 = pneg %p1832_p3  ;;  %p1839_p2 = por %p1838_p1, %p1837_p12 }
  0x7b   : > { %p1840_p4 = pnand %p1839_p2, %p1833_p7 }
  0x7d   : > { %1843 = shalt.err (!%p1840_p4)
}
  0x7e   : > { %1596 = dma.hbm_to_vmem [thread:$0]  (!%p2148_p11), %s2146_s11, 128, %s2152_s26, %s2154_s9, %s2316_s28, %s2316_s28, %s2315_s27  }
  0x7f   : > { %p2320_p9 = scmp.ne.s32.totalorder %s2311_s21, 0 }
  0x80   : > { %s2188_s12 = sand.u32 (!%p2320_p9), 1, %s1910_s14   ;;  %p2321_p0 = scmp.ne.s32.totalorder (!%p2320_p9), %s2308_s19, 0 }
  0x81   : > { %367 = sbr.rel (%p2320_p9) target bundleno = 1221 (0x4c5), region = 60  ;;  %s1404_s30 = sshll.u32 (!%p2320_p9), %s2188_s12, 3 }
  0x82   : > { %s370_s22 = scalar_lea.sflag (!%p2320_p9), [#allocation3], %s2188_s12  ;;  %s2192_s25 = scalar_lea.vmem (!%p2320_p9), [#allocation2], %s1404_s30 }
  0x88   : > { %1889 = dma.done.wait (%p2321_p0), %s370_s22, 128  }
  0x89   : > { %1891 = vsyncadd (%p2321_p0), %s370_s22, 4294967168  ;;  %p2322_p11 = scmp.eq.s32.totalorder %s2010_s17, 0 }
  0x8b   : > { %1893 = dma.done.wait (%p2322_p11), [#allocation6], 3072   ;;  %p2323_p8 = pmov %p2322_p11 }
  0x8d   : > { %1895 = vsyncadd (%p2323_p8), [#allocation6], 4294964224  ;;  %p2324_p13 = pmov %p2323_p8 }
  0x8e   : > { %p2325_p6 = pmov %p2323_p8 }
  0x8f   : > { %1897 = dma.done.wait (%p2324_p13), [#allocation9], 2048  }
  0x90   : > { %1899 = vsyncadd (%p2325_p6), [#allocation9], 4294965248  ;;  %v1928_v0 = vmov 0.0   ;;  %vm1929_vm0 = vmmov 0   ;;  %v1653_v1 = vld [vmem:[#allocation5] sm:$0xff]   ;;  %v1654_v2 = vld [vmem:[#allocation5 + $0x8] sm:$0xff]  }
  0x91   : > { %1547 = vmatprep.subr.bf16.mxu0 %v1928_v0  ;;  %1563 = vmatprep.mubr.msk.bf16.mxu0 %vm1929_vm0, %v1928_v0  ;;  %v1655_v3 = vld [vmem:[#allocation5 + $0x10] sm:$0xff]   ;;  %v1656_v4 = vld [vmem:[#allocation5 + $0x18] sm:$0xff]   ;;  %v1657_v5 = vld [vmem:[#allocation5 + $0x20] sm:$0xff]   ;;  %v1930_v36 = vmov 0   ;;  %s1408_s30 = sshll.u32 %s2188_s12, 4  ;;  %s2326_s19 = sld [smem:[#allocation18_spill]] }
  0x92   : > { %1548 = vmatpush3.bf16.msra.mxu0 %v1653_v1  ;;  %v1658_v6 = vld [vmem:[#allocation5 + $0x28] sm:$0xff]   ;;  %v1659_v7 = vld [vmem:[#allocation5 + $0x30] sm:$0xff]   ;;  %v1660_v8 = vld [vmem:[#allocation5 + $0x38] sm:$0xff]   ;;  %727 = vmatprep.mubr.bf16.mxu1 %v1930_v36  ;;  %s421_s21 = scalar_lea.vmem [#allocation10], %s1408_s30  ;;  %s1493_s28 = sshll.u32 %s2010_s17, 8 }
  0x93   : > { %1549 = vmatprep.subr.bf16.mxu0 %v1928_v0  ;;  %v1661_v9 = vld [vmem:[%s2192_s25] sm:$0xff]   ;;  %v1662_v17 = vld [vmem:[#allocation7 + $0x4] ss:$8 sps:$4 sm:$0xff]   ;;  %v2210_v18 = vld [vmem:[#allocation7] ss:$8 sps:$4 sm:$0xff]   ;;  %s1292_s27 = sshll.u32 %s421_s21, 4  ;;  %s2234_s27 = int_to_ptr.vmem [resolvable:$true] %s1292_s27 }
  0x94   : > { %v1409_v10 = vld [vmem:[%s2285_s2] ss:$0 sm:$0xff]  ;;  %695 = vmatprep.subr.bf16.mxu1 %v1662_v17  ;;  %v1665_v27 = vld [vmem:[#allocation7 + $0x14] ss:$8 sps:$4 sm:$0xff]   ;;  %v1668_v29 = vld [vmem:[#allocation7 + $0x24] ss:$8 sps:$4 sm:$0xff]  }
  0x95   : > { %696 = vmatpush1.bf16.msra.mxu1 %v2210_v18  ;;  %v1667_v28 = vld [vmem:[#allocation7 + $0x10] ss:$8 sps:$4 sm:$0xff]   ;;  %v1670_v30 = vld [vmem:[#allocation7 + $0x20] ss:$8 sps:$4 sm:$0xff]   ;;  %v1671_v31 = vld [vmem:[#allocation7 + $0x34] ss:$8 sps:$4 sm:$0xff]  }
  0x96   : > { %1550 = vmatpush3.bf16.msra.mxu0 %v1654_v2  ;;  %697 = vmatprep.subr.bf16.mxu1 %v1665_v27  ;;  %v1673_v32 = vld [vmem:[#allocation7 + $0x30] ss:$8 sps:$4 sm:$0xff]   ;;  %v1674_v33 = vld [vmem:[#allocation7 + $0x44] ss:$8 sps:$4 sm:$0xff]   ;;  %v1676_v34 = vld [vmem:[#allocation7 + $0x40] ss:$8 sps:$4 sm:$0xff]  }
  0x97   : > { %1551 = vmatprep.subr.bf16.mxu0 %v1928_v0  ;;  %v1677_v35 = vld [vmem:[#allocation7 + $0x54] ss:$8 sps:$4 sm:$0xff]   ;;  %v1679_v37 = vld [vmem:[#allocation7 + $0x50] ss:$8 sps:$4 sm:$0xff]   ;;  %v1680_v38 = vld [vmem:[#allocation7 + $0x64] ss:$8 sps:$4 sm:$0xff]  }
  0x98   : > { %v1682_v39 = vld [vmem:[#allocation7 + $0x60] ss:$8 sps:$4 sm:$0xff]   ;;  %v1683_v40 = vld [vmem:[#allocation7 + $0x74] ss:$8 sps:$4 sm:$0xff]   ;;  %v1685_v41 = vld [vmem:[#allocation7 + $0x70] ss:$8 sps:$4 sm:$0xff]  }
  0x99   : > { %698 = vmatpush1.bf16.msra.mxu1 %v1667_v28  ;;  %v1419_v50 = vld [vmem:[%s2286_s3] ss:$0 sm:$0xff]  ;;  %v1686_v62 = vld [vmem:[#allocation8 + $0x40] sm:$0xff]   ;;  %v1689_v1 = vld [vmem:[#allocation8 + $0x8] sm:$0xff]   ;;  %s2327_s1 = sld [smem:[#allocation19_spill]]  ;;  %s1279_s13 = scalar_lea.sflag [#allocation4], %s2188_s12 }
  0x9a   : > { %1552 = vmatpush3.bf16.msra.mxu0 %v1655_v3  ;;  %699 = vmatprep.subr.bf16.mxu1 %v1668_v29  ;;  %v1420_v54 = vld [vmem:[%s2287_s4] ss:$0 sm:$0xff]  ;;  %v1687_v63 = vld [vmem:[#allocation8] sm:$0xff]   ;;  %s1844_s23 = scalar_lea.vmem %s2234_s27, 256  ;;  %s1931_s17 = smov [#allocation10]  }
  0x9b   : > { %1553 = vmatprep.subr.bf16.mxu0 %v1928_v0  ;;  %v932_v61 = vld [vmem:[%s2288_s5] sm:$0xf]  ;;  %p1845_p10 = scmp.ne.s32.totalorder %s2234_s27, %s1844_s23  ;;  %s1848_s24 = sshll.u32 %s1931_s17, 4  ;;  %s1849_s24 = int_to_ptr.vmem [resolvable:$false] %s1848_s24 }
  0x9c   : > { %v1690_v2 = vld [vmem:[#allocation8 + $0x50] sm:$0xff]   ;;  %s1850_s29 = scalar_lea.vmem %s1849_s24, 512  ;;  %p1851_p12 = scmp.lt.s32.totalorder %s2234_s27, %s1849_s24 }
  0x9d   : > { %700 = vmatpush1.bf16.msra.mxu1 %v1670_v30  ;;  %v1691_v3 = vld [vmem:[#allocation8 + $0x10] sm:$0xff]   ;;  %p1846_p3 = pnand %p1845_p10, %p2137_p5  ;;  %p1852_p1 = scmp.lt.s32.totalorder %s1850_s29, %s1844_s23 }
  0x9e   : > { %1554 = vmatpush3.bf16.msra.mxu0 %v1656_v4  ;;  %701 = vmatprep.subr.bf16.mxu1 %v1671_v31  ;;  %v1692_v4 = vld [vmem:[#allocation8 + $0x58] sm:$0xff]  }
  0x9f   : > { %1555 = vmatprep.subr.bf16.mxu0 %v1928_v0  ;;  %s2239_s9 = scalar_lea.hbm %s2327_s1, %s1493_s28  ;;  %p1847_p7 = pneg %p1846_p3 }
  0xa0   : > { %p1853_p2 = por %p1852_p1, %p1851_p12 }
  0xa1   : > { %702 = vmatpush1.bf16.msra.mxu1 %v1673_v32 }
  0xa2   : > { %1556 = vmatpush3.bf16.msra.mxu0 %v1657_v5  ;;  %703 = vmatprep.subr.bf16.mxu1 %v1674_v33  ;;  %v1693_v5 = vld [vmem:[#allocation8 + $0x18] sm:$0xff]   ;;  %p1854_p4 = pnand %p1853_p2, %p1847_p7 }
  0xa3   : > { %1557 = vmatprep.subr.bf16.mxu0 %v1928_v0 }
  0xa5   : > { %704 = vmatpush1.bf16.msra.mxu1 %v1676_v34 }
  0xa6   : > { %1558 = vmatpush3.bf16.msra.mxu0 %v1658_v6  ;;  %705 = vmatprep.subr.bf16.mxu1 %v1677_v35  ;;  %v1694_v6 = vld [vmem:[#allocation8 + $0x60] sm:$0xff]  }
  0xa7   : > { %1559 = vmatprep.subr.bf16.mxu0 %v1928_v0 }
  0xa9   : > { %706 = vmatpush1.bf16.msra.mxu1 %v1679_v37 }
  0xaa   : > { %1560 = vmatpush3.bf16.msra.mxu0 %v1659_v7  ;;  %707 = vmatprep.subr.bf16.mxu1 %v1680_v38  ;;  %v1695_v7 = vld [vmem:[#allocation8 + $0x20] sm:$0xff]  }
  0xab   : > { %1561 = vmatprep.subr.bf16.mxu0 %v1928_v0  ;;  %v1688_v0 = vld [vmem:[#allocation8 + $0x48] sm:$0xff]  }
  0xad   : > { %708 = vmatpush1.bf16.msra.mxu1 %v1682_v39 }
  0xae   : > { %1562 = vmatpush3.bf16.msra.mxu0 %v1660_v8  ;;  %709 = vmatprep.subr.bf16.mxu1 %v1683_v40  ;;  %v1696_v8 = vld [vmem:[#allocation8 + $0x68] sm:$0xff]  }
  0xaf   : > { %1503 = vmatprep.subr.bf16.mxu0 %v1686_v62  ;;  %v1706_v62 = vld [vmem:[#allocation8 + $0x50] sm:$0xff]  }
  0xb1   : > { %1564 = vmatmul.mubr.bf16.vlgmr.msra.gmra.mrb[0].mxu0 %v1661_v9  ;;  %710 = vmatpush1.bf16.msra.mxu1 %v1685_v41  ;;  %v1697_v9 = vld [vmem:[#allocation8 + $0x28] sm:$0xff]  }
  0xb2   : > { %1041 = vmatprep.subr.bf16.mxu1 %v1662_v17  ;;  %1504 = vmatpush3.bf16.msra.mxu0 %v1687_v63 }
  0xb3   : > { %1505 = vmatprep.subr.bf16.mxu0 %v1688_v0 }
  0xb6   : > { %1506 = vmatpush3.bf16.msra.mxu0 %v1689_v1 }
  0xb7   : > { %1507 = vmatprep.subr.bf16.mxu0 %v1690_v2  ;;  %v1707_v2 = vld [vmem:[#allocation8 + $0x10] sm:$0xff]  }
  0xba   : > { %1508 = vmatpush3.bf16.msra.mxu0 %v1691_v3 }
  0xbb   : > { %1509 = vmatprep.subr.bf16.mxu0 %v1692_v4  ;;  %v1708_v4 = vld [vmem:[#allocation8 + $0x58] sm:$0xff]  }
  0xbe   : > { %1510 = vmatpush3.bf16.msra.mxu0 %v1693_v5 }
  0xbf   : > { %1511 = vmatprep.subr.bf16.mxu0 %v1694_v6 }
  0xc2   : > { %1512 = vmatpush3.bf16.msra.mxu0 %v1695_v7 }
  0xc3   : > { %1513 = vmatprep.subr.bf16.mxu0 %v1696_v8  ;;  %v1709_v8 = vld [vmem:[#allocation8 + $0x18] sm:$0xff]  }
  0xc6   : > { %1514 = vmatpush3.bf16.msra.mxu0 %v1697_v9 }
 0x184   : > { %v536_v11 = vpop.f32.mrb[0].mxu0 }
 0x185   : > { %v537_v12 = vadd.f32 %v1409_v10, %v536_v11  ;;  %v1565_v13 = vpop.f32.mrb[1].mxu0  ;;  %v1699_v11 = vld [vmem:[#allocation8 + $0x30] sm:$0xff]  }
 0x186   : > { %v539_v14 = vpop.f32.mrb[2].mxu0  ;;  %v1701_v13 = vld [vmem:[#allocation8 + $0x38] sm:$0xff]  }
 0x187   : > { %543 = vadd.xlane.f32.xlu0 %v537_v12  ;;  %v1566_v15 = vpop.f32.mrb[3].mxu0  ;;  %v540_v16 = vadd.f32 %v1409_v10, %v539_v14  ;;  %v1698_v10 = vld [vmem:[#allocation8 + $0x70] sm:$0xff]   ;;  %v1702_v14 = vld [vmem:[#allocation8 + $0x40] sm:$0xff]  }
 0x188   : > { %1515 = vmatprep.subr.bf16.mxu0 %v1698_v10  ;;  %v605_v15 = vlaneseq  ;;  %v1710_v10 = vld [vmem:[#allocation8 + $0x60] sm:$0xff]  }
 0x189   : > { %1516 = vmatpush3.bf16.msra.mxu0 %v1699_v11  ;;  %v1711_v11 = vld [vmem:[#allocation8 + $0x20] sm:$0xff]  }
 0x18b   : > { %545 = vadd.xlane.f32.xlu0 %v540_v16 }
 0x214   : > { %v544_v19 = vpop.xlane.xlu0 %543 }
 0x215   : > { %v548_v20 = vmul.f32 0.0078125, %v544_v19 }
 0x217   : > { %v550_v21 = vsub.f32 %v537_v12, %v548_v20  ;;  %v1700_v12 = vld [vmem:[#allocation8 + $0x78] sm:$0xff]  }
 0x218   : > { %v546_v22 = vpop.xlane.xlu0 %545  ;;  %1517 = vmatprep.subr.bf16.mxu0 %v1700_v12  ;;  %v1712_v12 = vld [vmem:[#allocation8 + $0x68] sm:$0xff]  }
 0x219   : > { %v549_v23 = vmul.f32 0.0078125, %v546_v22  ;;  %v552_v24 = vmul.f32 %v550_v21, %v550_v21  ;;  %1518 = vmatpush3.bf16.msra.mxu0 %v1701_v13  ;;  %v1713_v13 = vld [vmem:[#allocation8 + $0x28] sm:$0xff]  }
 0x21a   : > { %1525 = vmatprep.subr.bf16.mxu0 %v1702_v14  ;;  %v1714_v14 = vld [vmem:[#allocation8 + $0x70] sm:$0xff]  }
 0x21b   : > { %v551_v25 = vsub.f32 %v540_v16, %v549_v23  ;;  %554 = vadd.xlane.f32.xlu1 %v552_v24  ;;  %v606_v16 = vshrl.u32 %v605_v15, 7 }
 0x21d   : > { %v553_v26 = vmul.f32 %v551_v25, %v551_v25  ;;  %v607_v17 = vsub.s32 0, %v606_v16  ;;  %v611_v19 = vsub.s32 1, %v606_v16  ;;  %v1715_v16 = vld [vmem:[#allocation8 + $0x30] sm:$0xff]  }
 0x21f   : > { %556 = vadd.xlane.f32.xlu1 %v553_v26 }
 0x2a8   : > { %v555_v42 = vpop.xlane.xlu1 %554 }
 0x2a9   : > { %v558_v43 = vmul.f32 0.0078125, %v555_v42  ;;  %v949_v42 = vld [vmem:[%s2290_s7] sm:$0x3] }
 0x2ab   : > { %v560_v44 = vadd.f32 1e-06, %v558_v43 }
 0x2ac   : > { %v557_v45 = vpop.xlane.xlu1 %556 }
 0x2ad   : > { %1718 = vrsqrt.f32 %v560_v44  ;;  %v559_v46 = vmul.f32 0.0078125, %v557_v45 }
 0x2af   : > { %v561_v47 = vadd.f32 1e-06, %v559_v46  ;;  %v954_v46 = vrot.slane %v949_v42, %v607_v17 }
 0x2b1   : > { %1720 = vrsqrt.f32 %v561_v47 }
 0x2b7   : > { %v1719_v48 = vpop.eup %1718 }
 0x2b8   : > { %v564_v49 = vmul.f32 %v1719_v48, %v550_v21  ;;  %v958_v48 = vrot.slane %v949_v42, %v611_v19 }
 0x2ba   : > { %v573_v53 = vmul.f32 %v1419_v50, %v564_v49 }
 0x2bb   : > { %v1721_v51 = vpop.eup %1720 }
 0x2bc   : > { %v565_v52 = vmul.f32 %v1721_v51, %v551_v25  ;;  %v582_v56 = vadd.f32 %v1420_v54, %v573_v53  ;;  %v1704_v53 = vld [vmem:[#allocation8 + $0x48] sm:$0xff]  }
 0x2be   : > { %v574_v55 = vmul.f32 %v1419_v50, %v565_v52  ;;  %v1703_v50 = vld [vmem:[#allocation8] sm:$0xff]  }
 0x2c0   : > { %v583_v57 = vadd.f32 %v1420_v54, %v574_v55 }
 0x2c2   : > { %v584_v58 = vadd.f32 %v583_v57, %v582_v56 }
 0x2c4   : > { %v585_v59 = vmul.f32 0.5, %v584_v58 }
 0x2c6   : > { %v586_v60 = vpack.c.bf16 %v585_v59, %v585_v59 }
 0x2c8   : > { %728 = vmatmul.mubr.bf16.vlgmr.msra.gmra.mrb[0].mxu1 %v586_v60  ;;  %v1705_v60 = vld [vmem:[#allocation8 + $0x8] sm:$0xff]  }
 0x2c9   : > { %1042 = vmatpush1.bf16.msra.mxu1 %v2210_v18  ;;  %1073 = vmatprep.mubr.bf16.mxu1 %v1930_v36  ;;  %v603_v18 = vld [vmem:[%s2290_s7] sm:$0x3] }
 0x2ca   : > { %1043 = vmatprep.subr.bf16.mxu1 %v1665_v27  ;;  %v608_v20 = vrot.slane %v603_v18, %v607_v17  ;;  %v612_v21 = vrot.slane %v603_v18, %v611_v19  ;;  %v1716_v18 = vld [vmem:[#allocation8 + $0x78] sm:$0xff]  }
 0x2cd   : > { %1044 = vmatpush1.bf16.msra.mxu1 %v1667_v28 }
 0x2ce   : > { %1045 = vmatprep.subr.bf16.mxu1 %v1668_v29 }
 0x2d1   : > { %1046 = vmatpush1.bf16.msra.mxu1 %v1670_v30 }
 0x2d2   : > { %1047 = vmatprep.subr.bf16.mxu1 %v1671_v31 }
 0x2d5   : > { %1048 = vmatpush1.bf16.msra.mxu1 %v1673_v32 }
 0x2d6   : > { %1049 = vmatprep.subr.bf16.mxu1 %v1674_v33 }
 0x2d9   : > { %1050 = vmatpush1.bf16.msra.mxu1 %v1676_v34 }
 0x2da   : > { %1051 = vmatprep.subr.bf16.mxu1 %v1677_v35 }
 0x2dd   : > { %1052 = vmatpush1.bf16.msra.mxu1 %v1679_v37 }
 0x2de   : > { %1053 = vmatprep.subr.bf16.mxu1 %v1680_v38 }
 0x2e1   : > { %1054 = vmatpush1.bf16.msra.mxu1 %v1682_v39 }
 0x2e2   : > { %1055 = vmatprep.subr.bf16.mxu1 %v1683_v40 }
 0x2e5   : > { %1056 = vmatpush1.bf16.msra.mxu1 %v1685_v41 }
 0x2e8   : > { %1074 = vmatmul.mubr.bf16.vlgmr.msra.gmra.mrb[4].mxu1 %v932_v61 }
 0x39b   : > { %v729_v22 = vpop.f32.mrb[0].mxu1 }
 0x39c   : > { %v730_v23 = vadd.f32 %v729_v22, %v608_v20  ;;  %v731_v24 = vpop.f32.mrb[1].mxu1  ;;  %v1717_v22 = vld [vmem:[#allocation8 + $0x38] sm:$0xff]  }
 0x39d   : > { %v732_v25 = vadd.f32 %v731_v24, %v612_v21  ;;  %v733_v26 = vpop.f32.mrb[2].mxu1 }
 0x39e   : > { %v736_v27 = vmul.f32 %v730_v23, %v730_v23  ;;  %v734_v28 = vpop.f32.mrb[3].mxu1 }
 0x39f   : > { %v737_v29 = vmul.f32 %v732_v25, %v732_v25 }
 0x3a0   : > { %v738_v30 = vmul.f32 %v736_v27, %v730_v23 }
 0x3a1   : > { %v739_v31 = vmul.f32 %v737_v29, %v732_v25  ;;  %v1437_v29 = vld [vmem:[%s2326_s19] ss:$0 sm:$0xff] }
 0x3a2   : > { %v740_v32 = vmul.f32 0.044715, %v738_v30 }
 0x3a3   : > { %v741_v33 = vmul.f32 0.044715, %v739_v31 }
 0x3a4   : > { %v742_v34 = vadd.f32 %v740_v32, %v730_v23 }
 0x3a5   : > { %v743_v35 = vadd.f32 %v741_v33, %v732_v25 }
 0x3a6   : > { %v744_v36 = vmul.f32 0.7978846, %v742_v34 }
 0x3a7   : > { %v745_v37 = vmul.f32 0.7978846, %v743_v35 }
 0x3a8   : > { %1722 = vtanh.f32 %v744_v36 }
 0x3a9   : > { %1724 = vtanh.f32 %v745_v37 }
 0x3b2   : > { %v1723_v38 = vpop.eup %1722 }
 0x3b3   : > { %v1725_v39 = vpop.eup %1724  ;;  %v748_v40 = vadd.f32 1.0, %v1723_v38 }
 0x3b4   : > { %v749_v41 = vadd.f32 1.0, %v1725_v39 }
 0x3b5   : > { %v750_v43 = vmul.f32 0.5, %v748_v40 }
 0x3b6   : > { %v751_v44 = vmul.f32 0.5, %v749_v41 }
 0x3b7   : > { %v752_v45 = vmul.f32 %v750_v43, %v730_v23 }
 0x3b8   : > { %v753_v47 = vmul.f32 %v751_v44, %v732_v25 }
 0x3b9   : > { %v754_v52 = vpack.c.bf16 %v752_v45, %v752_v45 }
 0x3ba   : > { %v755_v49 = vpack.c.bf16 %v753_v47, %v753_v47 }
 0x3bb   : > { %v1075_v51 = vpop.f32.mrb[4].mxu1 }
 0x3bc   : > { %v1076_v54 = vadd.f32 %v1075_v51, %v954_v46  ;;  %v1077_v55 = vpop.f32.mrb[5].mxu1  ;;  %923 = vmatprep.mubr.bf16.mxu0 %v755_v49 }
 0x3bd   : > { %v1078_v56 = vadd.f32 %v1077_v55, %v958_v48  ;;  %v1079_v57 = vpop.f32.mrb[6].mxu1  ;;  %924 = vmatmul.mubr.bf16.vlgmr.msra.gmra.mrb[4].mxu0 %v754_v52 }
 0x3be   : > { %v1082_v58 = vmul.f32 %v1076_v54, %v1076_v54  ;;  %v1080_v59 = vpop.f32.mrb[7].mxu1  ;;  %1526 = vmatpush3.bf16.msra.mxu0 %v1703_v50 }
 0x3bf   : > { %v1083_v61 = vmul.f32 %v1078_v56, %v1078_v56  ;;  %1527 = vmatprep.subr.bf16.mxu0 %v1704_v53 }
 0x3c0   : > { %v1084_v63 = vmul.f32 %v1082_v58, %v1076_v54 }
 0x3c1   : > { %v1085_v0 = vmul.f32 %v1083_v61, %v1078_v56 }
 0x3c2   : > { %v1086_v1 = vmul.f32 0.044715, %v1084_v63  ;;  %1528 = vmatpush3.bf16.msra.mxu0 %v1705_v60 }
 0x3c3   : > { %v1087_v3 = vmul.f32 0.044715, %v1085_v0  ;;  %1529 = vmatprep.subr.bf16.mxu0 %v1706_v62 }
 0x3c4   : > { %v1088_v5 = vadd.f32 %v1086_v1, %v1076_v54 }
 0x3c5   : > { %v1089_v6 = vadd.f32 %v1087_v3, %v1078_v56 }
 0x3c6   : > { %v1090_v7 = vmul.f32 0.7978846, %v1088_v5  ;;  %1530 = vmatpush3.bf16.msra.mxu0 %v1707_v2 }
 0x3c7   : > { %v1091_v9 = vmul.f32 0.7978846, %v1089_v6  ;;  %1531 = vmatprep.subr.bf16.mxu0 %v1708_v4 }
 0x3c8   : > { %1726 = vtanh.f32 %v1090_v7 }
 0x3c9   : > { %1728 = vtanh.f32 %v1091_v9 }
 0x3ca   : > { %1532 = vmatpush3.bf16.msra.mxu0 %v1709_v8 }
 0x3cb   : > { %1533 = vmatprep.subr.bf16.mxu0 %v1710_v10 }
 0x3ce   : > { %1534 = vmatpush3.bf16.msra.mxu0 %v1711_v11 }
 0x3cf   : > { %1535 = vmatprep.subr.bf16.mxu0 %v1712_v12 }
 0x3d2   : > { %v1727_v15 = vpop.eup %1726  ;;  %1536 = vmatpush3.bf16.msra.mxu0 %v1713_v13 }
 0x3d3   : > { %v1729_v17 = vpop.eup %1728  ;;  %1537 = vmatprep.subr.bf16.mxu0 %v1714_v14  ;;  %v1094_v19 = vadd.f32 1.0, %v1727_v15 }
 0x3d4   : > { %v1095_v20 = vadd.f32 1.0, %v1729_v17 }
 0x3d5   : > { %v1096_v21 = vmul.f32 0.5, %v1094_v19 }
 0x3d6   : > { %1538 = vmatpush3.bf16.msra.mxu0 %v1715_v16  ;;  %v1097_v23 = vmul.f32 0.5, %v1095_v20 }
 0x3d7   : > { %1539 = vmatprep.subr.bf16.mxu0 %v1716_v18  ;;  %v1098_v24 = vmul.f32 %v1096_v21, %v1076_v54 }
 0x3d8   : > { %v1099_v25 = vmul.f32 %v1097_v23, %v1078_v56 }
 0x3d9   : > { %v1100_v27 = vpack.c.bf16 %v1098_v24, %v1098_v24 }
 0x3da   : > { %1540 = vmatpush3.bf16.msra.mxu0 %v1717_v22  ;;  %v1101_v26 = vpack.c.bf16 %v1099_v25, %v1099_v25 }
 0x3dc   : > { %1269 = vmatprep.mubr.bf16.mxu0 %v1101_v26 }
 0x3dd   : > { %1270 = vmatmul.mubr.bf16.vlgmr.msra.gmra.mrb[8].mxu0 %v1100_v27 }
 0x490   : > { %v1519_v28 = vpop.f32.mrb[4].mxu0 }
 0x491   : > { %v1520_v30 = vpop.f32.mrb[5].mxu0 }
 0x492   : > { %v1521_v31 = vadd.f32 %v1520_v30, %v1519_v28  ;;  %v1522_v32 = vpop.f32.mrb[6].mxu0 }
 0x493   : > { %v1523_v33 = vpop.f32.mrb[7].mxu0 }
 0x494   : > { %v926_v34 = vadd.f32 %v1521_v31, %v1437_v29 }
 0x496   : > { %931 = vst [vmem:[%s421_s21] sm:$0xff] %v926_v34 }
 0x4b0   : > { %v1541_v35 = vpop.f32.mrb[8].mxu0 }
 0x4b1   : > { %v1542_v36 = vpop.f32.mrb[9].mxu0 }
 0x4b2   : > { %v1543_v37 = vadd.f32 %v1542_v36, %v1541_v35  ;;  %v1544_v38 = vpop.f32.mrb[10].mxu0 }
 0x4b3   : > { %v1545_v39 = vpop.f32.mrb[11].mxu0 }
 0x4b4   : > { %v1272_v40 = vadd.f32 %v1543_v37, %v1437_v29 }
 0x4b6   : > { %1277 = vst [vmem:[%s421_s21 + $0x8] sm:$0xff] %v1272_v40 }
 0x4b7   : > { %1857 = shalt.err (!%p1854_p4)
}
 0x4b8   : > { %s1858_s30 = scalar_lea.hbm %s2239_s9, 256  ;;  %s1862_s19 = scalar_lea.hbm %s2327_s1, 512 }
 0x4b9   : > { %p1859_p9 = scmp.ne.s32.totalorder %s2239_s9, %s1858_s30  ;;  %p1863_p8 = scmp.lt.u32.totalorder %s2239_s9, %s2327_s1 }
 0x4ba   : > { %p1864_p13 = scmp.lt.u32.totalorder %s1862_s19, %s1858_s30  ;;  %p1866_p10 = scmp.lt.u32.totalorder %s1858_s30, %s2239_s9 }
 0x4bb   : > { %p1860_p0 = pnand %p1859_p9, %p2137_p5 }
 0x4bc   : > { %p1865_p6 = por %p1864_p13, %p1863_p8 }
 0x4bd   : > { %p1861_p11 = pneg %p1860_p0 }
 0x4be   : > { %p1867_p3 = por %p1866_p10, %p1865_p6 }
 0x4c0   : > { %p1868_p7 = pnand %p1867_p3, %p1861_p11 }
 0x4c2   : > { %1871 = shalt.err (!%p1868_p7)
}
 0x4c3   : > { %s1932_s11 = smov 128   ;;  %s1933_s26 = smov 8  }
 0x4c4   : > { %1581 = dma.vmem_to_hbm [thread:$0]  (%p2137_p5), %s2234_s27, 256, %s2239_s9, %s1279_s13, %s1932_s11, %s1932_s11, %s1933_s26  }
 0x4c5 PF: > { %s2328_s23 = sld [smem:[#allocation15_spill]]  ;;  %s2329_s17 = sld [smem:[#allocation16_spill]] }
 0x4c6   : > { %p2331_p1 = scmp.ge.s32.totalorder %s1918_s16, 2 }
 0x4cb   : > { %s1307_s24 = sand.u32 1, %s2328_s23   ;;  %p2330_p12 = scmp.ne.s32.totalorder %s2329_s17, 0 }
 0x4cc   : > { %s1308_s29 = scalar_lea.sflag [#allocation4], %s1307_s24 }
 0x4cd   : > { %p1598_p2 = pnand %p2331_p1, %p2330_p12 }
 0x4cf   : > { %1901 = dma.done.wait (!%p1598_p2), %s1308_s29, 256  }
 0x4d0   : > { %1903 = vsyncadd (!%p1598_p2), %s1308_s29, 4294967040  ;;  %p25_p4 = scmp.ge.s32.totalorder %s2102_s18, 4   ;;  %s2332_s13 = smov %s1910_s14 }
 0x4d1   : > { %s2333_s14 = smov %s1914_s15  ;;  %s2334_s15 = smov %s2133_s20 }
 0x4d2   : > { %s2335_s16 = smov %s2102_s18  ;;  %27 = sbr.rel (!%p25_p4) target bundleno = 11 (0xb), region = 117 }
 0x4d9   :  { %1313 = vsyncpa [#allocation3], 1 }
 0x4da   :  { %1315 = vsyncpa [#allocation3 + $0x1], 1 }
 0x4db   :  { %1316 = vsyncpa [#allocation6], 1 }
 0x4dc   :  { %1317 = vsyncpa [#allocation9], 1 }
 0x4dd   :  { %1318 = vsyncpa [#allocation4], 1 }
 0x4de   :  { %1320 = vsyncpa [#allocation4 + $0x1], 1 }

</bundles_post_ra>
